<compile_context>
chip_gen: v6e
topology: v6e:2x2x1
jax: 0.10.0
libtpu: 0.0.40
codegen_flags: <defaults>
</compile_context>

<pallas_src>
from typing import NamedTuple

import numpy as np
import jax
import jax.numpy as jnp
from jax.experimental import pallas as pl
from jax.experimental.pallas import tpu as pltpu

_VMEM = pltpu.MemorySpace.VMEM
_LANE = 128
_SUBLANE = 8


def _round_up(x, m):
    return ((x + m - 1) // m) * m


# ---------------------------------------------------------------------------
# Pallas kernel: exact one-hot gather of A=pe@W1+b1 -> LeakyReLU -> Linear2
# ---------------------------------------------------------------------------
def _pos_emb_kernel(t_ref, a_ref, w2_ref, b2_ref, o_ref):
    # t_ref: (br, 1) int32 timestep indices. Padded batch rows hold 0 and
    # silently compute row-0's embedding; they lie outside the valid region.
    t = t_ref[...]
    br = t_ref.shape[0]
    tp = a_ref.shape[0]

    # In-kernel gather of A rows via 0/1 one-hot matmul on the MXU (exact in
    # f32, no dynamic-gather lowering needed).
    iota = jax.lax.broadcasted_iota(jnp.int32, (br, tp), 1)
    onehot = (iota == t).astype(jnp.float32)                       # (br, Tp)
    h = jnp.dot(onehot, a_ref[...],
                preferred_element_type=jnp.float32)                # (br, Hp)
    h = jnp.where(h >= 0, h, 0.2 * h)                              # LeakyReLU(0.2), f32 VPU
    o = jnp.dot(h, w2_ref[...],
                preferred_element_type=jnp.float32) + b2_ref[...]  # (br, Hp)
    o_ref[...] = o.astype(o_ref.dtype)


# ---------------------------------------------------------------------------
# One-time parameter setup: fold pe@W1+b1, pad everything to lane-dense tiles.
# ---------------------------------------------------------------------------
class PositionalEmbeddingParams(NamedTuple):
    a_p: jax.Array     # (Tp, Hp)  padded  pe @ W1 + b1
    w2_p: jax.Array    # (Hp, Hp)  padded  W2
    b2_p: jax.Array    # (1, Hp)   padded  b2
    max_T: int
    emb_hdim: int


def make_positional_embedding_params(pe, w1, b1, w2, b2):
    """Hoisted constant work: fold first linear into the table and zero-pad
    all stationary operands ONCE (nothing here runs per forward call)."""
    max_T, _ = pe.shape
    H = w1.shape[1]
    Tp = _round_up(max_T, _SUBLANE)
    Hp = _round_up(H, _LANE)
    f32 = jnp.float32

    a = jnp.dot(pe.astype(f32), w1.astype(f32)) + b1.astype(f32)   # (max_T, H)
    a_p = jnp.zeros((Tp, Hp), f32).at[:max_T, :H].set(a)
    w2_p = jnp.zeros((Hp, Hp), f32).at[:H, :H].set(w2.astype(f32))
    b2_p = jnp.zeros((1, Hp), f32).at[:, :H].set(b2.astype(f32))
    return PositionalEmbeddingParams(a_p=a_p, w2_p=w2_p, b2_p=b2_p,
                                     max_T=max_T, emb_hdim=H)


# ---------------------------------------------------------------------------
# Per-call forward: only t is padded per call.
# ---------------------------------------------------------------------------
def positional_embedding_forward(t, params, *, block_rows=256, trim=True):
    """t: int32 (B,) indices into the pe table.

    Returns (B, emb_hdim) f32 if trim=True (module-equivalent), or the padded
    lane-dense (Bp, Hp) slab if trim=False (lets the consumer fuse/skip the
    slice and avoid an extra HBM round-trip)."""
    B = t.shape[0]
    Tp, Hp = params.a_p.shape
    H = params.emb_hdim

    Bp = _round_up(max(B, _SUBLANE), _SUBLANE)
    # One fat block for small batches (splitting a latency-bound call across
    # cores only adds overhead); large batches naturally get >=2 grid steps
    # which the "parallel" axis shards across v7x's 2 TensorCores.
    br = min(block_rows, Bp)
    Bp = _round_up(Bp, br)

    t_p = t.astype(jnp.int32).reshape(-1, 1)
    if Bp != B:
        # Padded rows select row 0 of A; harmless, outside the valid region.
        t_p = jnp.pad(t_p, ((0, Bp - B), (0, 0)))

    grid = (Bp // br,)
    out = pl.pallas_call(
        _pos_emb_kernel,
        out_shape=jax.ShapeDtypeStruct((Bp, Hp), jnp.float32),
        grid=grid,
        in_specs=[
            pl.BlockSpec((br, 1), lambda i: (i, 0), memory_space=_VMEM),    # t
            pl.BlockSpec((Tp, Hp), lambda i: (0, 0), memory_space=_VMEM),   # A (stationary)
            pl.BlockSpec((Hp, Hp), lambda i: (0, 0), memory_space=_VMEM),   # W2 (stationary)
            pl.BlockSpec((1, Hp), lambda i: (0, 0), memory_space=_VMEM),    # b2 (stationary)
        ],
        out_specs=pl.BlockSpec((br, Hp), lambda i: (i, 0), memory_space=_VMEM),
        compiler_params=pltpu.CompilerParams(
            dimension_semantics=("parallel",)),   # megacore sharding when grid > 1
    )(t_p, params.a_p, params.w2_p, params.b2_p)

    if trim:
        out = out[:B, :H]
    return out


# ---------------------------------------------------------------------------
# Deterministic parameter construction (PyTorch-equivalent init + spectral norm)
# ---------------------------------------------------------------------------
def make_pe_table(max_T, emb_dim):
    pe = np.zeros((max_T, emb_dim), dtype=np.float32)
    position = np.arange(0, max_T, dtype=np.float32)[:, None]
    div_term = np.exp(np.arange(0, emb_dim, 2, dtype=np.float32)
                      * -(np.log(10000.0) / emb_dim))
    pe[:, 0::2] = np.sin(position * div_term)
    pe[:, 1::2] = np.cos(position * div_term)
    return jnp.asarray(pe)


def spectral_normalize(w_torch_layout, n_iter=50):
    """w_torch_layout: (out, in). Divide by largest singular value (power iter)."""
    w = np.asarray(w_torch_layout, dtype=np.float32)
    u = np.ones((w.shape[0],), dtype=np.float32)
    u /= np.linalg.norm(u)
    v = None
    for _ in range(n_iter):
        v = w.T @ u
        v /= (np.linalg.norm(v) + 1e-12)
        u = w @ v
        u /= (np.linalg.norm(u) + 1e-12)
    sigma = float(u @ (w @ v))
    return w / sigma


def init_linear(key, in_dim, out_dim, use_spc_norm=True):
    """PyTorch nn.Linear default init; returns (W_in_out, b_1_out) for x @ W + b."""
    k_w, k_b = jax.random.split(key)
    bound = 1.0 / np.sqrt(in_dim)
    w = jax.random.uniform(k_w, (out_dim, in_dim), jnp.float32, -bound, bound)
    b = jax.random.uniform(k_b, (1, out_dim), jnp.float32, -bound, bound)
    w = np.asarray(w)
    if use_spc_norm:
        w = spectral_normalize(w)
    return jnp.asarray(w.T), b  # store transposed: (in, out)


# ---------------------------------------------------------------------------
if __name__ == "__main__":
    max_T, emb_dim, emb_hdim = 16, 32, 32
    batch = 8

    key = jax.random.PRNGKey(0)
    k_t, k_l1, k_l2 = jax.random.split(key, 3)

    pe = make_pe_table(max_T, emb_dim)
    w1, b1 = init_linear(k_l1, emb_dim, emb_hdim, use_spc_norm=True)
    w2, b2 = init_linear(k_l2, emb_hdim, emb_hdim, use_spc_norm=True)

    # One-time setup: fold + pad constants (nothing padded per forward call).
    params = make_positional_embedding_params(pe, w1, b1, w2, b2)

    t = jax.random.randint(k_t, (batch,), 0, max_T, dtype=jnp.int32)

    out = positional_embedding_forward(t, params)
    out = jax.block_until_ready(out)

    # Pure-JAX reference check (original module math, no folding, no Pallas).
    x_ref = jnp.take(pe, t, axis=0)
    h_ref = x_ref @ w1 + b1
    h_ref = jnp.where(h_ref >= 0, h_ref, 0.2 * h_ref)
    ref = h_ref @ w2 + b2
    np.testing.assert_allclose(np.asarray(out), np.asarray(ref), rtol=1e-5, atol=1e-5)

    assert out.shape == (batch, emb_hdim)
    print("KERNEL_OK")
</pallas_src>

<mosaic_0001>
module attributes {stable_mosaic.version = 11 : i64} {
  func.func @_pos_emb_kernel(%arg0: i32, %arg1: memref<8x1xi32, #tpu.memory_space<vmem>>, %arg2: memref<16x128xf32, #tpu.memory_space<vmem>>, %arg3: memref<128x128xf32, #tpu.memory_space<vmem>>, %arg4: memref<1x128xf32, #tpu.memory_space<vmem>>, %arg5: memref<8x128xf32, #tpu.memory_space<vmem>>) attributes {dimension_semantics = [#tpu.dimension_semantics<parallel>], iteration_bounds = array<i64: 1>, scalar_prefetch = 0 : i64, scratch_operands = 0 : i64, tpu.core_type = #tpu.core_type<tc>, window_params = [{transform_indices = @transform_0, window_bounds = array<i64: 8, 1>}, {pipeline_mode = #tpu.pipeline_mode<synchronous>, transform_indices = @transform_1, window_bounds = array<i64: 16, 128>}, {pipeline_mode = #tpu.pipeline_mode<synchronous>, transform_indices = @transform_2, window_bounds = array<i64: 128, 128>}, {pipeline_mode = #tpu.pipeline_mode<synchronous>, transform_indices = @transform_3, window_bounds = array<i64: 1, 128>}, {transform_indices = @transform_4, window_bounds = array<i64: 8, 128>}]} {
    %c0 = arith.constant 0 : index
    %c0_0 = arith.constant 0 : index
    %0 = vector.load %arg1[%c0, %c0_0] : memref<8x1xi32, #tpu.memory_space<vmem>>, vector<8x1xi32>
    %1 = tpu.iota {dimensions = array<i32: 1>} : vector<8x16xi32>
    %2 = vector.broadcast %0 : vector<8x1xi32> to vector<8x16xi32>
    %3 = arith.cmpi eq, %1, %2 : vector<8x16xi32>
    %4 = arith.extui %3 : vector<8x16xi1> to vector<8x16xi32>
    %5 = arith.sitofp %4 : vector<8x16xi32> to vector<8x16xf32>
    %c0_1 = arith.constant 0 : index
    %c0_2 = arith.constant 0 : index
    %6 = vector.load %arg2[%c0_1, %c0_2] : memref<16x128xf32, #tpu.memory_space<vmem>>, vector<16x128xf32>
    %cst = arith.constant dense<0.000000e+00> : vector<8x128xf32>
    %7 = tpu.matmul %5, %6, %cst {dimension_numbers = #tpu.dot_dimension_numbers<[1], [0], [0], [1], [0, 0, 1, 1], [], []>} : vector<8x16xf32>, vector<16x128xf32>, vector<8x128xf32> -> vector<8x128xf32>
    %cst_3 = arith.constant 0.000000e+00 : f32
    %8 = vector.broadcast %cst_3 : f32 to vector<8x128xf32>
    %9 = arith.cmpf oge, %7, %8 : vector<8x128xf32>
    %cst_4 = arith.constant 2.000000e-01 : f32
    %10 = vector.broadcast %cst_4 : f32 to vector<8x128xf32>
    %11 = arith.mulf %10, %7 : vector<8x128xf32>
    %12 = arith.select %9, %7, %11 : vector<8x128xi1>, vector<8x128xf32>
    %c0_5 = arith.constant 0 : index
    %c0_6 = arith.constant 0 : index
    %13 = vector.load %arg3[%c0_5, %c0_6] : memref<128x128xf32, #tpu.memory_space<vmem>>, vector<128x128xf32>
    %cst_7 = arith.constant dense<0.000000e+00> : vector<8x128xf32>
    %14 = tpu.matmul %12, %13, %cst_7 {dimension_numbers = #tpu.dot_dimension_numbers<[1], [0], [0], [1], [0, 0, 1, 1], [], []>} : vector<8x128xf32>, vector<128x128xf32>, vector<8x128xf32> -> vector<8x128xf32>
    %c0_8 = arith.constant 0 : index
    %c0_9 = arith.constant 0 : index
    %15 = vector.load %arg4[%c0_8, %c0_9] : memref<1x128xf32, #tpu.memory_space<vmem>>, vector<1x128xf32>
    %16 = vector.broadcast %15 : vector<1x128xf32> to vector<8x128xf32>
    %17 = arith.addf %14, %16 : vector<8x128xf32>
    %c0_10 = arith.constant 0 : index
    %c0_11 = arith.constant 0 : index
    %18 = vector.load %arg5[%c0_10, %c0_11] : memref<8x128xf32, #tpu.memory_space<vmem>>, vector<8x128xf32>
    tpu.vector_store %arg5[%c0_10, %c0_11], %17 {strides = array<i32>} : memref<8x128xf32, #tpu.memory_space<vmem>>, vector<8x128xf32>,
    return
  }
  func.func @transform_0(%arg0: i32) -> (i32, i32) {
    %c0_i32 = arith.constant 0 : i32
    %c0_i32_0 = arith.constant 0 : i32
    return %arg0, %c0_i32 : i32, i32
  }
  func.func @transform_1(%arg0: i32) -> (i32, i32) {
    %c0_i32 = arith.constant 0 : i32
    %c0_i32_0 = arith.constant 0 : i32
    %c0_i32_1 = arith.constant 0 : i32
    return %c0_i32, %c0_i32_0 : i32, i32
  }
  func.func @transform_2(%arg0: i32) -> (i32, i32) {
    %c0_i32 = arith.constant 0 : i32
    %c0_i32_0 = arith.constant 0 : i32
    %c0_i32_1 = arith.constant 0 : i32
    return %c0_i32, %c0_i32_0 : i32, i32
  }
  func.func @transform_3(%arg0: i32) -> (i32, i32) {
    %c0_i32 = arith.constant 0 : i32
    %c0_i32_0 = arith.constant 0 : i32
    %c0_i32_1 = arith.constant 0 : i32
    return %c0_i32, %c0_i32_0 : i32, i32
  }
  func.func @transform_4(%arg0: i32) -> (i32, i32) {
    %c0_i32 = arith.constant 0 : i32
    %c0_i32_0 = arith.constant 0 : i32
    return %arg0, %c0_i32 : i32, i32
  }
}

</mosaic_0001>

<bundles_post_ra>
// kernel: tpu_custom_call.1
= control target key start
LH: loop header
LB: loop body
LE: loop exit
PB: predicated region body
PF: predicated region fallthrough
CT: control target
= control target key end

     0   :  { %9 = vsyncpa [#allocation3], 0  ;;  %s453_s0 = inlined_call_operand.vmem [shape: s32[8,1], index: 0, kind: input, shape index: {}]   ;;  %s454_s1 = inlined_call_operand.hbm [shape: f32[16,128], index: 1, kind: input, shape index: {}]   ;;  %s455_s2 = inlined_call_operand.hbm [shape: f32[128,128], index: 2, kind: input, shape index: {}]   ;;  %s456_s3 = inlined_call_operand.vmem [shape: f32[1,128], index: 3, kind: input, shape index: {}]   ;;  %s457_s4 = inlined_call_operand.hbm [shape: f32[8,128], index: 4, kind: output, shape index: {}]  }
   0x1   :  { %10 = vsyncpa [#allocation6], 0 }
   0x2   :  { %11 = vsyncpa [#allocation4], 0  ;;  %s384_s15 = smov [#allocation2]  }
   0x3   :  { %s19_s16 = sshll.u32 %s384_s15, 4  ;;  %s20_s16 = int_to_ptr.vmem [resolvable:$true] %s19_s16 }
   0x4   :  { %s326_s17 = scalar_lea.vmem %s20_s16, 256  ;;  %p331_p1 = scmp.lt.s32.totalorder %s20_s16, %s20_s16 }
   0x5   :  { %p327_p0 = scmp.ne.s32.totalorder %s20_s16, %s326_s17  ;;  %p332_p2 = scmp.lt.s32.totalorder %s326_s17, %s326_s17 }
   0x7   :  { %p333_p3 = por %p332_p2, %p331_p1 }
   0x9   :  { %p334_p4 = pnand %p333_p3, %p327_p0 }
   0xb   :  { %337 = shalt.err (!%p334_p4)
}
   0xc   :  { %s385_s18 = smov 128   ;;  %s386_s19 = smov 8  }
   0xd   :  { %25 = dma.hbm_to_vmem [thread:$0]  %s454_s1, 256, %s20_s16, [#allocation3], %s385_s18, %s385_s18, %s386_s19  }
   0xe   :  { %s387_s22 = smov [#allocation5]  }
   0xf   :  { %s31_s23 = sshll.u32 %s387_s22, 4  ;;  %s32_s23 = int_to_ptr.vmem [resolvable:$true] %s31_s23 }
  0x10   :  { %s346_s24 = scalar_lea.vmem %s32_s23, 2048  ;;  %p351_p6 = scmp.lt.s32.totalorder %s32_s23, %s32_s23 }
  0x11   :  { %p347_p5 = scmp.ne.s32.totalorder %s32_s23, %s346_s24  ;;  %p352_p7 = scmp.lt.s32.totalorder %s346_s24, %s346_s24 }
  0x13   :  { %p353_p8 = por %p352_p7, %p351_p6 }
  0x15   :  { %p354_p9 = pnand %p353_p8, %p347_p5 }
  0x17   :  { %357 = shalt.err (!%p354_p9)
}
  0x18   :  { %37 = dma.hbm_to_vmem [thread:$0]  %s455_s2, 2048, %s32_s23, [#allocation6], %s385_s18, %s385_s18, %s386_s19  }
  0x19   :  { %378 = dma.done.wait [#allocation3], 256  }
  0x1a   :  { %379 = vsyncadd [#allocation3], 4294967040 }
  0x1b   :  { %380 = dma.done.wait [#allocation6], 2048  }
  0x1c   :  { %381 = vsyncadd [#allocation6], 4294965248  ;;  %v388_v0 = vmov 0   ;;  %v389_v1 = vmov 0.0   ;;  %vm390_vm0 = vmmov 0   ;;  %v46_v2 = vld [vmem:[%s453_s0] sm:$0xff]  ;;  %v47_v19 = vlaneseq }
  0x1d   :  { %317 = vset.pattern.permute.xlu0 %v388_v0  ;;  %267 = vmatprep.subr.mxu0 %v389_v1  ;;  %v56_v3 = vld [vmem:[#allocation2 + $0x8] sm:$0xff]  ;;  %v55_v4 = vld [vmem:[#allocation2] sm:$0xff]  ;;  %v147_v7 = vld [vmem:[#allocation5 + $0x68] sm:$0xff]  ;;  %vm57_vm1 = vcmask 130048   ;;  %s391_s28 = smov [#allocation7]  }
  0x1e   :  { %274 = vmatprep.subr.mxu1 %v389_v1  ;;  %271 = vmatprep.mubr.msk.f32.mxu0 %vm390_vm0, %v389_v1  ;;  %v149_v5 = vld [vmem:[#allocation5 + $0x78] sm:$0xff]  ;;  %v148_v6 = vld [vmem:[#allocation5 + $0x70] sm:$0xff]  ;;  %v146_v8 = vld [vmem:[#allocation5 + $0x60] sm:$0xff]  ;;  %v48_v20 = vand.u32 127, %v47_v19  ;;  %s234_s29 = sshll.u32 %s391_s28, 4  ;;  %s235_s29 = int_to_ptr.vmem [resolvable:$true] %s234_s29 }
  0x1f   :  { %306 = vmatprep.mubr.msk.f32.mxu1 %vm390_vm0, %v389_v1  ;;  %50 = vperm.xlu0 %317, %v46_v2   ;;  %v145_v9 = vld [vmem:[#allocation5 + $0x58] sm:$0xff]  ;;  %v144_v10 = vld [vmem:[#allocation5 + $0x50] sm:$0xff]  ;;  %v143_v11 = vld [vmem:[#allocation5 + $0x48] sm:$0xff]  ;;  %s358_s30 = scalar_lea.vmem %s235_s29, 128  ;;  %p363_p11 = scmp.lt.s32.totalorder %s235_s29, %s235_s29 }
  0x20   :  { %268 = vmatpush3.msra.mxu0 %v56_v3  ;;  %275 = vmatpush3.msra.mxu1 %v149_v5  ;;  %v142_v12 = vld [vmem:[#allocation5 + $0x40] sm:$0xff]  ;;  %v141_v13 = vld [vmem:[#allocation5 + $0x38] sm:$0xff]  ;;  %v140_v14 = vld [vmem:[#allocation5 + $0x30] sm:$0xff]  ;;  %p359_p10 = scmp.ne.s32.totalorder %s235_s29, %s358_s30  ;;  %p364_p12 = scmp.lt.s32.totalorder %s358_s30, %s358_s30 }
  0x21   :  { %269 = vmatprep.subr.mxu0 %v389_v1  ;;  %276 = vmatprep.subr.mxu1 %v389_v1  ;;  %v139_v15 = vld [vmem:[#allocation5 + $0x28] sm:$0xff]  ;;  %v138_v16 = vld [vmem:[#allocation5 + $0x20] sm:$0xff]  ;;  %v137_v17 = vld [vmem:[#allocation5 + $0x18] sm:$0xff] }
  0x22   :  { %270 = vmatpush3.msra.mxu0 %v55_v4  ;;  %277 = vmatpush3.msra.mxu1 %v148_v6  ;;  %v136_v18 = vld [vmem:[#allocation5 + $0x10] sm:$0xff]  ;;  %v135_v23 = vld [vmem:[#allocation5 + $0x8] sm:$0xff]  ;;  %v134_v24 = vld [vmem:[#allocation5] sm:$0xff]  ;;  %p365_p13 = por %p364_p12, %p363_p11 }
  0x23   :  { %278 = vmatprep.subr.mxu1 %v389_v1  ;;  %v246_v29 = vld [vmem:[%s456_s3] ss:$0 sm:$0xff] }
  0x24   :  { %279 = vmatpush3.msra.mxu1 %v147_v7  ;;  %p366_p0 = pnand %p365_p13, %p359_p10 }
  0x25   :  { %280 = vmatprep.subr.mxu1 %v389_v1 }
  0x26   :  { %281 = vmatpush3.msra.mxu1 %v146_v8 }
  0x27   :  { %282 = vmatprep.subr.mxu1 %v389_v1 }
  0x28   :  { %283 = vmatpush3.msra.mxu1 %v145_v9 }
  0x29   :  { %284 = vmatprep.subr.mxu1 %v389_v1 }
  0x2a   :  { %285 = vmatpush3.msra.mxu1 %v144_v10 }
  0x2b   :  { %286 = vmatprep.subr.mxu1 %v389_v1 }
  0x2c   :  { %287 = vmatpush3.msra.mxu1 %v143_v11 }
  0x2d   :  { %288 = vmatprep.subr.mxu1 %v389_v1 }
  0x2e   :  { %289 = vmatpush3.msra.mxu1 %v142_v12 }
  0x2f   :  { %290 = vmatprep.subr.mxu1 %v389_v1 }
  0x30   :  { %291 = vmatpush3.msra.mxu1 %v141_v13 }
  0x31   :  { %292 = vmatprep.subr.mxu1 %v389_v1 }
  0x32   :  { %293 = vmatpush3.msra.mxu1 %v140_v14 }
  0x33   :  { %294 = vmatprep.subr.mxu1 %v389_v1 }
  0x34   :  { %295 = vmatpush3.msra.mxu1 %v139_v15 }
  0x35   :  { %296 = vmatprep.subr.mxu1 %v389_v1 }
  0x36   :  { %297 = vmatpush3.msra.mxu1 %v138_v16 }
  0x37   :  { %298 = vmatprep.subr.mxu1 %v389_v1 }
  0x38   :  { %299 = vmatpush3.msra.mxu1 %v137_v17 }
  0x39   :  { %300 = vmatprep.subr.mxu1 %v389_v1 }
  0x3a   :  { %301 = vmatpush3.msra.mxu1 %v136_v18 }
  0x3b   :  { %302 = vmatprep.subr.mxu1 %v389_v1 }
  0x3c   :  { %303 = vmatpush3.msra.mxu1 %v135_v23 }
  0x3d   :  { %304 = vmatprep.subr.mxu1 %v389_v1 }
  0x3e   :  { %305 = vmatpush3.msra.mxu1 %v134_v24 }
  0x9a   :  { %v51_v21 = vpop.permute.xlu0 %50 }
  0x9b   :  { %vm52_vm2 = vcmp.eq.s32.totalorder %v48_v20, %v51_v21 }
  0x9c   :  { %v244_v22 = vsel %vm52_vm2, 1.0, %v389_v1 }
  0x9d   :  { %272 = vmatmul.mubr.msk.f32.vlgmr.msra.gmra.mxu0 %vm57_vm1, %v244_v22 }
 0x15d   :  { %v127_v25 = vpop.f32.mrf.mxu0 }
 0x15e   :  { %vm131_vm3 = vcmp.ge.f32.partialorder %v127_v25, 0.0  ;;  %v132_v26 = vmul.f32 0.2, %v127_v25 }
 0x15f   :  { %v273_v27 = vpop.f32.mrf.mxu0 }
 0x160   :  { %v133_v28 = vsel %vm131_vm3, %v127_v25, %v132_v26 }
 0x161   :  { %307 = vmatmul.mubr.f32.vlgmr.msra.gmra.mxu1 %v133_v28 }
 0x221   :  { %v223_v30 = vpop.f32.mrf.mxu1 }
 0x222   :  { %v224_v31 = vadd.f32 %v246_v29, %v223_v30 }
 0x223   :  { %v308_v32 = vpop.f32.mrf.mxu1 }
 0x224   :  { %227 = vst [vmem:[#allocation7] sm:$0xff] %v224_v31 }
 0x225   :  { %369 = shalt.err (!%p366_p0)
}
 0x226   :  { %237 = dma.vmem_to_hbm [thread:$0]  %s235_s29, 128, %s457_s4, [#allocation4]  }
 0x227   :  { %382 = dma.done.wait [#allocation4], 128  }
 0x228   :  { %383 = vsyncadd [#allocation4], 4294967168 }
 0x229   :  { %241 = vsyncpa [#allocation3], 1 }
 0x22a   :  { %242 = vsyncpa [#allocation6], 1 }
 0x22b   :  { %243 = vsyncpa [#allocation4], 1 }

</bundles_post_ra>
